<compile_context>
chip_gen: v7x
topology: tpu7x:2x2x1
jax: 0.10.0
libtpu: 0.0.40
codegen_flags: <defaults>
</compile_context>

<pallas_src>
import math

import jax
import jax.numpy as jnp
from jax.experimental import pallas as pl
from jax.experimental.pallas import tpu as pltpu

_LANE = 128
_SUBLANE = 8


def _round_up(n, m):
    return ((n + m - 1) // m) * m


# --------------------------------------------------------------------------- #
# Kernel body: three matmuls + two ReLUs on a resident batch tile.            #
# --------------------------------------------------------------------------- #
def context_mask_kernel(x_ref,
                        w1_ref, b1_ref,
                        w2_ref, b2_ref,
                        w3_ref, b3_ref,
                        o_ref):
    x = x_ref[...]                                               # (bt, in_p) bf16

    h = jnp.dot(x, w1_ref[...], preferred_element_type=jnp.float32)
    h = jnp.maximum(h + b1_ref[...], 0.0)                        # ReLU(layer_1), f32

    h = jnp.dot(h.astype(jnp.bfloat16), w2_ref[...],
                preferred_element_type=jnp.float32)
    h = jnp.maximum(h + b2_ref[...], 0.0)                        # ReLU(layer_2), f32

    y = jnp.dot(h.astype(jnp.bfloat16), w3_ref[...],
                preferred_element_type=jnp.float32)
    o_ref[...] = (y + b3_ref[...]).astype(o_ref.dtype)           # layer_3 (no act)


# --------------------------------------------------------------------------- #
# Hardware query (best-effort, safe fallback).                                #
# --------------------------------------------------------------------------- #
def _tpu_vmem_budget_and_cores():
    """Returns (usable VMEM bytes per core, assumed #TensorCores per chip)."""
    vmem = 64 << 20                      # conservative fallback = v7x per-TC VMEM
    try:
        info = pltpu.get_tpu_info()
        vmem = int(getattr(info, "vmem_capacity_bytes", vmem))
    except Exception:
        pass
    cores = 2 if vmem <= (64 << 20) else 1   # v7x: 64 MiB/TC, 2 TCs; v5e/v6e: 1 TC
    return int(0.8 * vmem), cores


# --------------------------------------------------------------------------- #
# pallas_call builder.                                                        #
# --------------------------------------------------------------------------- #
def _build_call(B, bt, in_p, hid_p, out_p, out_dtype, vmem_limit, cost,
                single_buffer_weights):
    grid = (pl.cdiv(B, bt),)

    def const(shape):
        kwargs = {}
        if single_buffer_weights:
            kwargs["pipeline_mode"] = pl.Buffered(1)   # resident, no double-buffer
        return pl.BlockSpec(shape, lambda i: (0,) * len(shape), **kwargs)

    return pl.pallas_call(
        context_mask_kernel,
        out_shape=jax.ShapeDtypeStruct((B, out_p), out_dtype),
        grid=grid,
        in_specs=[
            pl.BlockSpec((bt, in_p), lambda i: (i, 0)),          # x tile (bf16)
            const((in_p, hid_p)),  const((1, hid_p)),            # layer_1
            const((hid_p, hid_p)), const((1, hid_p)),            # layer_2
            const((hid_p, out_p)), const((1, out_p)),            # layer_3
        ],
        out_specs=pl.BlockSpec((bt, out_p), lambda i: (i, 0)),
        compiler_params=pltpu.CompilerParams(
            dimension_semantics=("parallel",),
            vmem_limit_bytes=int(vmem_limit),
        ),
        cost_estimate=cost,
    )


# --------------------------------------------------------------------------- #
# Wrapper: padding, bf16 weight prep, tile selection, VMEM budget.            #
# --------------------------------------------------------------------------- #
def context_mask_model(x, params):
    """x: (B, in_dim) f32 -> (B, out_dim) f32. Fused 3-layer MLP on TPU."""
    B, in_dim = x.shape
    hid = params["w1"].shape[1]
    out_dim = params["w3"].shape[1]

    # ---- pad all feature dims to multiples of 128 (lane-dense, MXU-full) ----
    in_p = _round_up(in_dim, _LANE)
    hid_p = _round_up(hid, _LANE)
    out_p = _round_up(out_dim, _LANE)

    def pad2(w, r, c):
        return jnp.pad(w, ((0, r - w.shape[0]), (0, c - w.shape[1])))

    def pad_bias(b, n):
        return jnp.pad(b, (0, n - b.shape[0])).reshape(1, n).astype(jnp.float32)

    w1 = pad2(params["w1"], in_p, hid_p).astype(jnp.bfloat16)
    w2 = pad2(params["w2"], hid_p, hid_p).astype(jnp.bfloat16)
    w3 = pad2(params["w3"], hid_p, out_p).astype(jnp.bfloat16)
    b1 = pad_bias(params["b1"], hid_p)
    b2 = pad_bias(params["b2"], hid_p)
    b3 = pad_bias(params["b3"], out_p)
    x_p = jnp.pad(x, ((0, 0), (0, in_p - in_dim))).astype(jnp.bfloat16)

    # ---- generation-aware VMEM budget + batch-tile selection ----
    budget, n_cores = _tpu_vmem_budget_and_cores()
    bf16, f32 = 2, 4
    weight_bytes = ((in_p * hid_p + hid_p * hid_p + hid_p * out_p) * bf16
                    + (2 * hid_p + out_p) * f32)                 # single-buffered
    per_row = (2 * in_p * bf16          # double-buffered x tile
               + 2 * out_p * f32        # double-buffered out tile
               + 2 * hid_p * f32)       # f32 activations live in-kernel
    headroom = 8 << 20
    # TODO(synk): if weight_bytes ever exceeds ~0.6*budget (large hid/out_dim on
    # v7x's 64 MiB), switch to an out_dim-"parallel" / hid-"arbitrary" grid with
    # a VMEM f32 accumulator (pl.when init/finalize) instead of fully resident
    # weights.
    max_bt = max((budget - weight_bytes - headroom) // per_row, _SUBLANE)
    max_bt = (max_bt // _SUBLANE) * _SUBLANE

    cap = min(1024, max_bt)
    if n_cores > 1 and B > 2 * _SUBLANE:
        # Ensure >= n_cores grid steps so both v7x TensorCores get work.
        cap = min(cap, _round_up(pl.cdiv(B, n_cores), _SUBLANE))
    cap = max(cap, _SUBLANE)
    bt = B if B <= cap else cap          # block == full array dim is always legal

    vmem_limit = min(budget,
                     max(32 << 20, weight_bytes + bt * per_row + headroom))

    cost = pl.CostEstimate(
        flops=2 * B * (in_p * hid_p + hid_p * hid_p + hid_p * out_p),
        transcendentals=0,
        bytes_accessed=B * in_p * bf16 + weight_bytes + B * out_p * f32,
    )

    args = (x_p, w1, b1, w2, b2, w3, b3)
    try:
        out = _build_call(B, bt, in_p, hid_p, out_p, x.dtype, vmem_limit, cost,
                          single_buffer_weights=True)(*args)
    except Exception:
        # Fallback if pl.Buffered(1) weight specs are rejected by this runtime:
        # default double-buffering, with the budget bumped accordingly.
        out = _build_call(B, bt, in_p, hid_p, out_p, x.dtype,
                          min(budget, vmem_limit + weight_bytes), cost,
                          single_buffer_weights=False)(*args)

    return out[:, :out_dim]              # drop lane padding


# --------------------------------------------------------------------------- #
# References and parameter construction.                                      #
# --------------------------------------------------------------------------- #
def context_mask_model_ref(x, p):
    """Pure-f32 reference matching ContextMaskModel.forward exactly."""
    h = jax.nn.relu(x @ p["w1"] + p["b1"])
    h = jax.nn.relu(h @ p["w2"] + p["b2"])
    return h @ p["w3"] + p["b3"]


def context_mask_model_ref_bf16(x, p):
    """Reference with the kernel's precision: bf16 dot inputs, f32 accumulate."""
    def dot(a, w):
        return jnp.dot(a.astype(jnp.bfloat16), w.astype(jnp.bfloat16),
                       preferred_element_type=jnp.float32)
    h = jax.nn.relu(dot(x, p["w1"]) + p["b1"])
    h = jax.nn.relu(dot(h, p["w2"]) + p["b2"])
    return dot(h, p["w3"]) + p["b3"]


def make_params(key, in_dim, out_dim):
    """Weights stored (in, out) so the kernel computes x @ W (== torch x @ W.T)."""
    hid = in_dim // 2
    ks = jax.random.split(key, 3)
    s_in = 1.0 / math.sqrt(in_dim)
    s_h = 1.0 / math.sqrt(hid)
    return {
        "w1": jax.random.normal(ks[0], (in_dim, hid), jnp.float32) * s_in,
        "b1": jnp.zeros((hid,), jnp.float32),
        "w2": jax.random.normal(ks[1], (hid, hid), jnp.float32) * s_h,
        "b2": jnp.zeros((hid,), jnp.float32),
        "w3": jax.random.normal(ks[2], (hid, out_dim), jnp.float32) * s_h,
        "b3": jnp.zeros((out_dim,), jnp.float32),
    }


if __name__ == "__main__":
    # Shapes implied by the module: in_dim = num_queries*2 + num_queries*d_model,
    # out_dim = num_queries*num_tokens.
    num_queries, d_model, num_tokens = 4, 32, 8
    in_dim = num_queries * 2 + num_queries * d_model      # 136
    out_dim = num_queries * num_tokens                    # 32
    B = 2

    key = jax.random.PRNGKey(0)
    kx, kp = jax.random.split(key)
    x = jax.random.normal(kx, (B, in_dim), jnp.float32)
    params = make_params(kp, in_dim, out_dim)

    out = jax.block_until_ready(context_mask_model(x, params))

    ref_bf = context_mask_model_ref_bf16(x, params)   # same matmul precision
    ref_f32 = context_mask_model_ref(x, params)       # exact PyTorch semantics
    assert out.shape == (B, out_dim)
    assert jnp.allclose(out, ref_bf, atol=2e-3, rtol=2e-3), (
        f"max abs err vs bf16 ref {jnp.max(jnp.abs(out - ref_bf))}")
    assert jnp.allclose(out, ref_f32, atol=1e-1), (
        f"max abs err vs f32 ref {jnp.max(jnp.abs(out - ref_f32))}")
    print("KERNEL_OK")
</pallas_src>

<mosaic_0001>
module attributes {stable_mosaic.version = 11 : i64} {
  func.func @context_mask_kernel(%arg0: i32, %arg1: memref<2x256xbf16, #tpu.memory_space<vmem>>, %arg2: memref<256x128xbf16, #tpu.memory_space<vmem>>, %arg3: memref<1x128xf32, #tpu.memory_space<vmem>>, %arg4: memref<128x128xbf16, #tpu.memory_space<vmem>>, %arg5: memref<1x128xf32, #tpu.memory_space<vmem>>, %arg6: memref<128x128xbf16, #tpu.memory_space<vmem>>, %arg7: memref<1x128xf32, #tpu.memory_space<vmem>>, %arg8: memref<2x128xf32, #tpu.memory_space<vmem>>) attributes {dimension_semantics = [#tpu.dimension_semantics<parallel>], iteration_bounds = array<i64: 1>, scalar_prefetch = 0 : i64, scratch_operands = 0 : i64, tpu.core_type = #tpu.core_type<tc>, window_params = [{transform_indices = @transform_0, window_bounds = array<i64: 2, 256>}, {pipeline_mode = #tpu.pipeline_mode<synchronous>, transform_indices = @transform_1, window_bounds = array<i64: 256, 128>}, {pipeline_mode = #tpu.pipeline_mode<synchronous>, transform_indices = @transform_2, window_bounds = array<i64: 1, 128>}, {pipeline_mode = #tpu.pipeline_mode<synchronous>, transform_indices = @transform_3, window_bounds = array<i64: 128, 128>}, {pipeline_mode = #tpu.pipeline_mode<synchronous>, transform_indices = @transform_4, window_bounds = array<i64: 1, 128>}, {pipeline_mode = #tpu.pipeline_mode<synchronous>, transform_indices = @transform_5, window_bounds = array<i64: 128, 128>}, {pipeline_mode = #tpu.pipeline_mode<synchronous>, transform_indices = @transform_6, window_bounds = array<i64: 1, 128>}, {transform_indices = @transform_7, window_bounds = array<i64: 2, 128>}]} {
    %c0 = arith.constant 0 : index
    %c0_0 = arith.constant 0 : index
    %0 = vector.load %arg1[%c0, %c0_0] : memref<2x256xbf16, #tpu.memory_space<vmem>>, vector<2x256xbf16>
    %c0_1 = arith.constant 0 : index
    %c0_2 = arith.constant 0 : index
    %1 = vector.load %arg2[%c0_1, %c0_2] : memref<256x128xbf16, #tpu.memory_space<vmem>>, vector<256x128xbf16>
    %cst = arith.constant dense<0.000000e+00> : vector<2x128xf32>
    %2 = tpu.matmul %0, %1, %cst {dimension_numbers = #tpu.dot_dimension_numbers<[1], [0], [0], [1], [0, 0, 1, 1], [], []>} : vector<2x256xbf16>, vector<256x128xbf16>, vector<2x128xf32> -> vector<2x128xf32>
    %c0_3 = arith.constant 0 : index
    %c0_4 = arith.constant 0 : index
    %3 = vector.load %arg3[%c0_3, %c0_4] : memref<1x128xf32, #tpu.memory_space<vmem>>, vector<1x128xf32>
    %4 = vector.broadcast %3 : vector<1x128xf32> to vector<2x128xf32>
    %5 = arith.addf %2, %4 : vector<2x128xf32>
    %cst_5 = arith.constant 0.000000e+00 : f32
    %6 = vector.broadcast %cst_5 : f32 to vector<2x128xf32>
    %7 = arith.maximumf %5, %6 : vector<2x128xf32>
    %8 = arith.truncf %7 : vector<2x128xf32> to vector<2x128xbf16>
    %c0_6 = arith.constant 0 : index
    %c0_7 = arith.constant 0 : index
    %9 = vector.load %arg4[%c0_6, %c0_7] : memref<128x128xbf16, #tpu.memory_space<vmem>>, vector<128x128xbf16>
    %cst_8 = arith.constant dense<0.000000e+00> : vector<2x128xf32>
    %10 = tpu.matmul %8, %9, %cst_8 {dimension_numbers = #tpu.dot_dimension_numbers<[1], [0], [0], [1], [0, 0, 1, 1], [], []>} : vector<2x128xbf16>, vector<128x128xbf16>, vector<2x128xf32> -> vector<2x128xf32>
    %c0_9 = arith.constant 0 : index
    %c0_10 = arith.constant 0 : index
    %11 = vector.load %arg5[%c0_9, %c0_10] : memref<1x128xf32, #tpu.memory_space<vmem>>, vector<1x128xf32>
    %12 = vector.broadcast %11 : vector<1x128xf32> to vector<2x128xf32>
    %13 = arith.addf %10, %12 : vector<2x128xf32>
    %cst_11 = arith.constant 0.000000e+00 : f32
    %14 = vector.broadcast %cst_11 : f32 to vector<2x128xf32>
    %15 = arith.maximumf %13, %14 : vector<2x128xf32>
    %16 = arith.truncf %15 : vector<2x128xf32> to vector<2x128xbf16>
    %c0_12 = arith.constant 0 : index
    %c0_13 = arith.constant 0 : index
    %17 = vector.load %arg6[%c0_12, %c0_13] : memref<128x128xbf16, #tpu.memory_space<vmem>>, vector<128x128xbf16>
    %cst_14 = arith.constant dense<0.000000e+00> : vector<2x128xf32>
    %18 = tpu.matmul %16, %17, %cst_14 {dimension_numbers = #tpu.dot_dimension_numbers<[1], [0], [0], [1], [0, 0, 1, 1], [], []>} : vector<2x128xbf16>, vector<128x128xbf16>, vector<2x128xf32> -> vector<2x128xf32>
    %c0_15 = arith.constant 0 : index
    %c0_16 = arith.constant 0 : index
    %19 = vector.load %arg7[%c0_15, %c0_16] : memref<1x128xf32, #tpu.memory_space<vmem>>, vector<1x128xf32>
    %20 = vector.broadcast %19 : vector<1x128xf32> to vector<2x128xf32>
    %21 = arith.addf %18, %20 : vector<2x128xf32>
    %c0_17 = arith.constant 0 : index
    %c0_18 = arith.constant 0 : index
    %22 = vector.load %arg8[%c0_17, %c0_18] : memref<2x128xf32, #tpu.memory_space<vmem>>, vector<2x128xf32>
    tpu.vector_store %arg8[%c0_17, %c0_18], %21 {strides = array<i32>} : memref<2x128xf32, #tpu.memory_space<vmem>>, vector<2x128xf32>,
    return
  }
  func.func @transform_0(%arg0: i32) -> (i32, i32) {
    %c0_i32 = arith.constant 0 : i32
    %c0_i32_0 = arith.constant 0 : i32
    return %arg0, %c0_i32 : i32, i32
  }
  func.func @transform_1(%arg0: i32) -> (i32, i32) {
    %c0_i32 = arith.constant 0 : i32
    %c0_i32_0 = arith.constant 0 : i32
    %c0_i32_1 = arith.constant 0 : i32
    return %c0_i32, %c0_i32_0 : i32, i32
  }
  func.func @transform_2(%arg0: i32) -> (i32, i32) {
    %c0_i32 = arith.constant 0 : i32
    %c0_i32_0 = arith.constant 0 : i32
    %c0_i32_1 = arith.constant 0 : i32
    return %c0_i32, %c0_i32_0 : i32, i32
  }
  func.func @transform_3(%arg0: i32) -> (i32, i32) {
    %c0_i32 = arith.constant 0 : i32
    %c0_i32_0 = arith.constant 0 : i32
    %c0_i32_1 = arith.constant 0 : i32
    return %c0_i32, %c0_i32_0 : i32, i32
  }
  func.func @transform_4(%arg0: i32) -> (i32, i32) {
    %c0_i32 = arith.constant 0 : i32
    %c0_i32_0 = arith.constant 0 : i32
    %c0_i32_1 = arith.constant 0 : i32
    return %c0_i32, %c0_i32_0 : i32, i32
  }
  func.func @transform_5(%arg0: i32) -> (i32, i32) {
    %c0_i32 = arith.constant 0 : i32
    %c0_i32_0 = arith.constant 0 : i32
    %c0_i32_1 = arith.constant 0 : i32
    return %c0_i32, %c0_i32_0 : i32, i32
  }
  func.func @transform_6(%arg0: i32) -> (i32, i32) {
    %c0_i32 = arith.constant 0 : i32
    %c0_i32_0 = arith.constant 0 : i32
    %c0_i32_1 = arith.constant 0 : i32
    return %c0_i32, %c0_i32_0 : i32, i32
  }
  func.func @transform_7(%arg0: i32) -> (i32, i32) {
    %c0_i32 = arith.constant 0 : i32
    %c0_i32_0 = arith.constant 0 : i32
    return %arg0, %c0_i32 : i32, i32
  }
}

module attributes {stable_mosaic.version = 11 : i64} {
  func.func @context_mask_kernel(%arg0: i32, %arg1: memref<2x256xbf16, #tpu.memory_space<vmem>>, %arg2: memref<256x128xbf16, #tpu.memory_space<vmem>>, %arg3: memref<1x128xf32, #tpu.memory_space<vmem>>, %arg4: memref<128x128xbf16, #tpu.memory_space<vmem>>, %arg5: memref<1x128xf32, #tpu.memory_space<vmem>>, %arg6: memref<128x128xbf16, #tpu.memory_space<vmem>>, %arg7: memref<1x128xf32, #tpu.memory_space<vmem>>, %arg8: memref<2x128xf32, #tpu.memory_space<vmem>>) attributes {dimension_semantics = [#tpu.dimension_semantics<parallel>], iteration_bounds = array<i64: 1>, scalar_prefetch = 0 : i64, scratch_operands = 0 : i64, tpu.core_type = #tpu.core_type<tc>, window_params = [{transform_indices = @transform_0, window_bounds = array<i64: 2, 256>}, {pipeline_mode = #tpu.pipeline_mode<synchronous>, transform_indices = @transform_1, window_bounds = array<i64: 256, 128>}, {pipeline_mode = #tpu.pipeline_mode<synchronous>, transform_indices = @transform_2, window_bounds = array<i64: 1, 128>}, {pipeline_mode = #tpu.pipeline_mode<synchronous>, transform_indices = @transform_3, window_bounds = array<i64: 128, 128>}, {pipeline_mode = #tpu.pipeline_mode<synchronous>, transform_indices = @transform_4, window_bounds = array<i64: 1, 128>}, {pipeline_mode = #tpu.pipeline_mode<synchronous>, transform_indices = @transform_5, window_bounds = array<i64: 128, 128>}, {pipeline_mode = #tpu.pipeline_mode<synchronous>, transform_indices = @transform_6, window_bounds = array<i64: 1, 128>}, {transform_indices = @transform_7, window_bounds = array<i64: 2, 128>}]} {
    %c0 = arith.constant 0 : index
    %c0_0 = arith.constant 0 : index
    %0 = vector.load %arg1[%c0, %c0_0] : memref<2x256xbf16, #tpu.memory_space<vmem>>, vector<2x256xbf16>
    %c0_1 = arith.constant 0 : index
    %c0_2 = arith.constant 0 : index
    %1 = vector.load %arg2[%c0_1, %c0_2] : memref<256x128xbf16, #tpu.memory_space<vmem>>, vector<256x128xbf16>
    %cst = arith.constant dense<0.000000e+00> : vector<2x128xf32>
    %2 = tpu.matmul %0, %1, %cst {dimension_numbers = #tpu.dot_dimension_numbers<[1], [0], [0], [1], [0, 0, 1, 1], [], []>} : vector<2x256xbf16>, vector<256x128xbf16>, vector<2x128xf32> -> vector<2x128xf32>
    %c0_3 = arith.constant 0 : index
    %c0_4 = arith.constant 0 : index
    %3 = vector.load %arg3[%c0_3, %c0_4] : memref<1x128xf32, #tpu.memory_space<vmem>>, vector<1x128xf32>
    %4 = vector.broadcast %3 : vector<1x128xf32> to vector<2x128xf32>
    %5 = arith.addf %2, %4 : vector<2x128xf32>
    %cst_5 = arith.constant 0.000000e+00 : f32
    %6 = vector.broadcast %cst_5 : f32 to vector<2x128xf32>
    %7 = arith.maximumf %5, %6 : vector<2x128xf32>
    %8 = arith.truncf %7 : vector<2x128xf32> to vector<2x128xbf16>
    %c0_6 = arith.constant 0 : index
    %c0_7 = arith.constant 0 : index
    %9 = vector.load %arg4[%c0_6, %c0_7] : memref<128x128xbf16, #tpu.memory_space<vmem>>, vector<128x128xbf16>
    %cst_8 = arith.constant dense<0.000000e+00> : vector<2x128xf32>
    %10 = tpu.matmul %8, %9, %cst_8 {dimension_numbers = #tpu.dot_dimension_numbers<[1], [0], [0], [1], [0, 0, 1, 1], [], []>} : vector<2x128xbf16>, vector<128x128xbf16>, vector<2x128xf32> -> vector<2x128xf32>
    %c0_9 = arith.constant 0 : index
    %c0_10 = arith.constant 0 : index
    %11 = vector.load %arg5[%c0_9, %c0_10] : memref<1x128xf32, #tpu.memory_space<vmem>>, vector<1x128xf32>
    %12 = vector.broadcast %11 : vector<1x128xf32> to vector<2x128xf32>
    %13 = arith.addf %10, %12 : vector<2x128xf32>
    %cst_11 = arith.constant 0.000000e+00 : f32
    %14 = vector.broadcast %cst_11 : f32 to vector<2x128xf32>
    %15 = arith.maximumf %13, %14 : vector<2x128xf32>
    %16 = arith.truncf %15 : vector<2x128xf32> to vector<2x128xbf16>
    %c0_12 = arith.constant 0 : index
    %c0_13 = arith.constant 0 : index
    %17 = vector.load %arg6[%c0_12, %c0_13] : memref<128x128xbf16, #tpu.memory_space<vmem>>, vector<128x128xbf16>
    %cst_14 = arith.constant dense<0.000000e+00> : vector<2x128xf32>
    %18 = tpu.matmul %16, %17, %cst_14 {dimension_numbers = #tpu.dot_dimension_numbers<[1], [0], [0], [1], [0, 0, 1, 1], [], []>} : vector<2x128xbf16>, vector<128x128xbf16>, vector<2x128xf32> -> vector<2x128xf32>
    %c0_15 = arith.constant 0 : index
    %c0_16 = arith.constant 0 : index
    %19 = vector.load %arg7[%c0_15, %c0_16] : memref<1x128xf32, #tpu.memory_space<vmem>>, vector<1x128xf32>
    %20 = vector.broadcast %19 : vector<1x128xf32> to vector<2x128xf32>
    %21 = arith.addf %18, %20 : vector<2x128xf32>
    %c0_17 = arith.constant 0 : index
    %c0_18 = arith.constant 0 : index
    %22 = vector.load %arg8[%c0_17, %c0_18] : memref<2x128xf32, #tpu.memory_space<vmem>>, vector<2x128xf32>
    tpu.vector_store %arg8[%c0_17, %c0_18], %21 {strides = array<i32>} : memref<2x128xf32, #tpu.memory_space<vmem>>, vector<2x128xf32>,
    return
  }
  func.func @transform_0(%arg0: i32) -> (i32, i32) {
    %c0_i32 = arith.constant 0 : i32
    %c0_i32_0 = arith.constant 0 : i32
    return %arg0, %c0_i32 : i32, i32
  }
  func.func @transform_1(%arg0: i32) -> (i32, i32) {
    %c0_i32 = arith.constant 0 : i32
    %c0_i32_0 = arith.constant 0 : i32
    %c0_i32_1 = arith.constant 0 : i32
    return %c0_i32, %c0_i32_0 : i32, i32
  }
  func.func @transform_2(%arg0: i32) -> (i32, i32) {
    %c0_i32 = arith.constant 0 : i32
    %c0_i32_0 = arith.constant 0 : i32
    %c0_i32_1 = arith.constant 0 : i32
    return %c0_i32, %c0_i32_0 : i32, i32
  }
  func.func @transform_3(%arg0: i32) -> (i32, i32) {
    %c0_i32 = arith.constant 0 : i32
    %c0_i32_0 = arith.constant 0 : i32
    %c0_i32_1 = arith.constant 0 : i32
    return %c0_i32, %c0_i32_0 : i32, i32
  }
  func.func @transform_4(%arg0: i32) -> (i32, i32) {
    %c0_i32 = arith.constant 0 : i32
    %c0_i32_0 = arith.constant 0 : i32
    %c0_i32_1 = arith.constant 0 : i32
    return %c0_i32, %c0_i32_0 : i32, i32
  }
  func.func @transform_5(%arg0: i32) -> (i32, i32) {
    %c0_i32 = arith.constant 0 : i32
    %c0_i32_0 = arith.constant 0 : i32
    %c0_i32_1 = arith.constant 0 : i32
    return %c0_i32, %c0_i32_0 : i32, i32
  }
  func.func @transform_6(%arg0: i32) -> (i32, i32) {
    %c0_i32 = arith.constant 0 : i32
    %c0_i32_0 = arith.constant 0 : i32
    %c0_i32_1 = arith.constant 0 : i32
    return %c0_i32, %c0_i32_0 : i32, i32
  }
  func.func @transform_7(%arg0: i32) -> (i32, i32) {
    %c0_i32 = arith.constant 0 : i32
    %c0_i32_0 = arith.constant 0 : i32
    return %arg0, %c0_i32 : i32, i32
  }
}

</mosaic_0001>

<bundles_post_ra>
// kernel: tpu_custom_call.1
= control target key start
LH: loop header
LB: loop body
LE: loop exit
PB: predicated region body
PF: predicated region fallthrough
CT: control target
= control target key end

     0   :  { %12 = vsyncpa [#allocation3], 0  ;;  %s948_s0 = inlined_call_operand.hbm [shape: bf16[2,256], index: 0, kind: input, shape index: {}]   ;;  %s949_s1 = inlined_call_operand.hbm [shape: bf16[256,128], index: 1, kind: input, shape index: {}]   ;;  %s950_s2 = inlined_call_operand.vmem [shape: f32[1,128], index: 2, kind: input, shape index: {}]   ;;  %s951_s3 = inlined_call_operand.hbm [shape: bf16[128,128], index: 3, kind: input, shape index: {}]   ;;  %s952_s4 = inlined_call_operand.vmem [shape: f32[1,128], index: 4, kind: input, shape index: {}]   ;;  %s953_s5 = inlined_call_operand.hbm [shape: bf16[128,128], index: 5, kind: input, shape index: {}]   ;;  %s954_s6 = inlined_call_operand.vmem [shape: f32[1,128], index: 6, kind: input, shape index: {}]   ;;  %s955_s7 = inlined_call_operand.hbm [shape: f32[2,128], index: 7, kind: output, shape index: {}]  }
   0x1   :  { %13 = vsyncpa [#allocation6], 0 }
   0x2   :  { %14 = vsyncpa [#allocation9], 0 }
   0x3   :  { %15 = vsyncpa [#allocation4], 0  ;;  %s802_s24 = smov [#allocation5]   ;;  %s684_s28 = scalar_lea.hbm %s949_s1, 2048 }
   0x4   :  { %s31_s25 = sshll.u32 %s802_s24, 4  ;;  %p685_p0 = scmp.ne.s32.totalorder %s949_s1, %s684_s28  ;;  %s32_s25 = int_to_ptr.vmem [resolvable:$true] %s31_s25 }
   0x5   :  { %p688_p1 = scmp.lt.u32.totalorder %s684_s28, %s949_s1 }
   0x7   :  { %p690_p2 = pnand %p688_p1, %p685_p0 }
   0x9   :  { %693 = shalt.err (!%p690_p2)
}
   0xa   :  { %s694_s10 = scalar_lea.vmem %s32_s25, 2048  ;;  %p699_p4 = scmp.lt.s32.totalorder %s32_s25, %s32_s25 }
   0xb   :  { %p695_p3 = scmp.ne.s32.totalorder %s32_s25, %s694_s10  ;;  %p700_p5 = scmp.lt.s32.totalorder %s694_s10, %s694_s10 }
   0xd   :  { %p701_p6 = por %p700_p5, %p699_p4 }
   0xf   :  { %p702_p7 = pnand %p701_p6, %p695_p3 }
  0x11   :  { %705 = shalt.err (!%p702_p7)
}
  0x12   :  { %s803_s11 = smov 64   ;;  %s804_s12 = smov 4  }
  0x13   :  { %37 = dma.hbm_to_vmem [thread:$0]  %s949_s1, 2048, %s32_s25, [#allocation6], %s803_s11, %s803_s11, %s804_s12  }
  0x14   :  { %s805_s15 = smov [#allocation2]   ;;  %s806_s17 = smov [#allocation7]  }
  0x15   :  { %s22_s16 = sshll.u32 %s805_s15, 4  ;;  %s45_s18 = sshll.u32 %s806_s17, 4  ;;  %s23_s16 = int_to_ptr.vmem [resolvable:$true] %s22_s16  ;;  %s46_s18 = int_to_ptr.vmem [resolvable:$true] %s45_s18 }
  0x16   :  { %s706_s21 = scalar_lea.hbm %s948_s0, 32 }
  0x17   :  { %p707_p8 = scmp.ne.s32.totalorder %s948_s0, %s706_s21  ;;  %p710_p9 = scmp.lt.u32.totalorder %s706_s21, %s948_s0 }
  0x19   :  { %p712_p10 = pnand %p710_p9, %p707_p8 }
  0x1b   :  { %715 = shalt.err (!%p712_p10)
}
  0x1c   :  { %s716_s1 = scalar_lea.vmem %s23_s16, 32  ;;  %p721_p12 = scmp.lt.s32.totalorder %s23_s16, %s23_s16 }
  0x1d   :  { %p717_p11 = scmp.ne.s32.totalorder %s23_s16, %s716_s1  ;;  %p722_p13 = scmp.lt.s32.totalorder %s716_s1, %s716_s1 }
  0x1f   :  { %p723_p0 = por %p722_p13, %p721_p12 }
  0x21   :  { %p724_p1 = pnand %p723_p0, %p717_p11 }
  0x23   :  { %727 = shalt.err (!%p724_p1)
}
  0x24   :  { %25 = dma.hbm_to_vmem [thread:$0]  %s948_s0, 32, %s23_s16, [#allocation3]  }
  0x25   :  { %s728_s30 = scalar_lea.hbm %s951_s3, 1024 }
  0x26   :  { %p729_p2 = scmp.ne.s32.totalorder %s951_s3, %s728_s30  ;;  %p732_p3 = scmp.lt.u32.totalorder %s728_s30, %s951_s3 }
  0x28   :  { %p734_p4 = pnand %p732_p3, %p729_p2 }
  0x2a   :  { %737 = shalt.err (!%p734_p4)
}
  0x2b   :  { %s738_s14 = scalar_lea.vmem %s46_s18, 1024  ;;  %p743_p6 = scmp.lt.s32.totalorder %s46_s18, %s46_s18 }
  0x2c   :  { %p739_p5 = scmp.ne.s32.totalorder %s46_s18, %s738_s14  ;;  %p744_p7 = scmp.lt.s32.totalorder %s738_s14, %s738_s14 }
  0x2e   :  { %p745_p8 = por %p744_p7, %p743_p6 }
  0x30   :  { %p746_p9 = pnand %p745_p8, %p739_p5 }
  0x32   :  { %749 = shalt.err (!%p746_p9)
}
  0x33   :  { %51 = dma.hbm_to_vmem [thread:$0]  %s951_s3, 1024, %s46_s18, [#allocation6], %s803_s11, %s803_s11, %s804_s12  }
  0x34   :  { %s807_s16 = smov [#allocation8]   ;;  %s750_s21 = scalar_lea.hbm %s953_s5, 1024 }
  0x35   :  { %s59_s17 = sshll.u32 %s807_s16, 4  ;;  %p751_p10 = scmp.ne.s32.totalorder %s953_s5, %s750_s21  ;;  %s60_s17 = int_to_ptr.vmem [resolvable:$true] %s59_s17 }
  0x36   :  { %p754_p11 = scmp.lt.u32.totalorder %s750_s21, %s953_s5 }
  0x38   :  { %p756_p12 = pnand %p754_p11, %p751_p10 }
  0x3a   :  { %759 = shalt.err (!%p756_p12)
}
  0x3b   :  { %s760_s1 = scalar_lea.vmem %s60_s17, 1024  ;;  %p765_p0 = scmp.lt.s32.totalorder %s60_s17, %s60_s17 }
  0x3c   :  { %p761_p13 = scmp.ne.s32.totalorder %s60_s17, %s760_s1  ;;  %p766_p1 = scmp.lt.s32.totalorder %s760_s1, %s760_s1 }
  0x3e   :  { %p767_p2 = por %p766_p1, %p765_p0 }
  0x40   :  { %p768_p3 = pnand %p767_p2, %p761_p13 }
  0x42   :  { %771 = shalt.err (!%p768_p3)
}
  0x43   :  { %65 = dma.hbm_to_vmem [thread:$0]  %s953_s5, 1024, %s60_s17, [#allocation9], %s803_s11, %s803_s11, %s804_s12  }
  0x44   :  { %794 = dma.done.wait [#allocation3], 32  }
  0x45   :  { %795 = vsyncadd [#allocation3], 4294967264 }
  0x46   :  { %796 = dma.done.wait [#allocation6], 3072  }
  0x47   :  { %797 = vsyncadd [#allocation6], 4294964224 }
  0x48   :  { %798 = dma.done.wait [#allocation9], 1024  }
  0x49   :  { %799 = vsyncadd [#allocation9], 4294966272  ;;  %v808_v0 = vmov 0.0   ;;  %v652_v1 = vld [vmem:[#allocation5 + $0x40] sm:$0xff]   ;;  %v654_v3 = vld [vmem:[#allocation5 + $0x48] sm:$0xff]   ;;  %v133_v9 = vlaneseq  ;;  %vm810_vm0 = vmmov 0  }
  0x4a   :  { %602 = vmatprep.subr.bf16.mxu1 %v808_v0  ;;  %v653_v2 = vld [vmem:[#allocation5] sm:$0xff]   ;;  %562 = vmatprep.subr.bf16.mxu0 %v652_v1  ;;  %v655_v4 = vld [vmem:[#allocation5 + $0x8] sm:$0xff]   ;;  %v656_v5 = vld [vmem:[#allocation5 + $0x50] sm:$0xff]   ;;  %v809_v7 = vmov 1966171168   ;;  %s811_s28 = smov [#allocation10]  }
  0x4b   :  { %563 = vmatpush3.bf16.msra.mxu0 %v653_v2  ;;  %v657_v6 = vld [vmem:[#allocation5 + $0x10] sm:$0xff]   ;;  %v131_v8 = vunpack.c.l.s4 %v809_v7  ;;  %v658_v10 = vld [vmem:[#allocation5 + $0x58] sm:$0xff]   ;;  %v134_v13 = vshrl.u32 %v133_v9, 7  ;;  %v660_v14 = vld [vmem:[#allocation5 + $0x60] sm:$0xff]   ;;  %618 = vmatprep.mubr.msk.bf16.mxu1 %vm810_vm0, %v808_v0  ;;  %s515_s29 = sshll.u32 %s811_s28, 4  ;;  %s516_s29 = int_to_ptr.vmem [resolvable:$true] %s515_s29 }
  0x4c   :  { %564 = vmatprep.subr.bf16.mxu0 %v654_v3  ;;  %v659_v11 = vld [vmem:[#allocation5 + $0x18] sm:$0xff]   ;;  %v661_v15 = vld [vmem:[#allocation5 + $0x20] sm:$0xff]   ;;  %v662_v16 = vld [vmem:[#allocation5 + $0x68] sm:$0xff]   ;;  %p777_p5 = scmp.lt.s32.totalorder %s516_s29, %s516_s29 }
  0x4d   :  { %v132_v12 = vunpack.c.0.s8 %v131_v8  ;;  %v527_v18 = vld.sshfl [vmem:[#allocation2] sm:$0x11 pattern:$0x75316420]  ;;  %v668_v20 = vld [vmem:[#allocation7] sm:$0xff]   ;;  %v663_v21 = vld [vmem:[#allocation5 + $0x28] sm:$0xff]  }
  0x4e   :  { %v129_v19 = vcombine.high %v527_v18, %v527_v18  ;;  %603 = vmatpush3.bf16.msra.mxu1 %v668_v20  ;;  %v669_v23 = vld [vmem:[#allocation7 + $0x8] sm:$0xff]   ;;  %v664_v24 = vld [vmem:[#allocation5 + $0x70] sm:$0xff]   ;;  %v666_v26 = vld [vmem:[#allocation5 + $0x78] sm:$0xff]  }
  0x4f   :  { %565 = vmatpush3.bf16.msra.mxu0 %v655_v4  ;;  %v135_v17 = vsub.s32 %v132_v12, %v134_v13  ;;  %604 = vmatprep.subr.bf16.mxu1 %v808_v0  ;;  %v665_v25 = vld [vmem:[#allocation5 + $0x30] sm:$0xff]   ;;  %v667_v28 = vld [vmem:[#allocation5 + $0x38] sm:$0xff]   ;;  %v672_v31 = vld [vmem:[#allocation7 + $0x20] sm:$0xff]  }
  0x50   :  { %566 = vmatprep.subr.bf16.mxu0 %v656_v5  ;;  %v670_v27 = vld [vmem:[#allocation7 + $0x10] sm:$0xff]   ;;  %v671_v29 = vld [vmem:[#allocation7 + $0x18] sm:$0xff]   ;;  %v673_v32 = vld [vmem:[#allocation7 + $0x28] sm:$0xff]  }
  0x51   :  { %v143_v22 = vrot.slane %v129_v19, %v135_v17  ;;  %v136_v30 = vrot.slane %v527_v18, %v135_v17  ;;  %v674_v33 = vld [vmem:[#allocation7 + $0x30] sm:$0xff]   ;;  %v675_v34 = vld [vmem:[#allocation7 + $0x38] sm:$0xff]   ;;  %v676_v35 = vld [vmem:[#allocation8] sm:$0xff]  }
  0x52   :  { %605 = vmatpush3.bf16.msra.mxu1 %v669_v23  ;;  %v677_v36 = vld [vmem:[#allocation8 + $0x8] sm:$0xff]   ;;  %v678_v37 = vld [vmem:[#allocation8 + $0x10] sm:$0xff]   ;;  %v679_v38 = vld [vmem:[#allocation8 + $0x18] sm:$0xff]  }
  0x53   :  { %567 = vmatpush3.bf16.msra.mxu0 %v657_v6  ;;  %274 = vmatprep.mubr.bf16.mxu0 %v143_v22  ;;  %v680_v39 = vld [vmem:[#allocation8 + $0x20] sm:$0xff]   ;;  %v681_v40 = vld [vmem:[#allocation8 + $0x28] sm:$0xff]   ;;  %v526_v42 = vld [vmem:[%s950_s2] ss:$0 sm:$0xff] }
  0x54   :  { %568 = vmatprep.subr.bf16.mxu0 %v658_v10  ;;  %606 = vmatprep.subr.bf16.mxu1 %v808_v0  ;;  %v682_v50 = vld [vmem:[#allocation8 + $0x30] sm:$0xff]   ;;  %v683_v51 = vld [vmem:[#allocation8 + $0x38] sm:$0xff]  }
  0x55   :  { %v544_v52 = vld [vmem:[%s952_s4] ss:$0 sm:$0xff]  ;;  %s772_s4 = scalar_lea.vmem %s516_s29, 32 }
  0x56   :  { %607 = vmatpush3.bf16.msra.mxu1 %v670_v27  ;;  %v553_v60 = vld [vmem:[%s954_s6] ss:$0 sm:$0xff]  ;;  %p773_p4 = scmp.ne.s32.totalorder %s516_s29, %s772_s4  ;;  %p778_p6 = scmp.lt.s32.totalorder %s772_s4, %s772_s4 }
  0x57   :  { %569 = vmatpush3.bf16.msra.mxu0 %v659_v11  ;;  %608 = vmatprep.subr.bf16.mxu1 %v808_v0 }
  0x58   :  { %570 = vmatprep.subr.bf16.mxu0 %v660_v14  ;;  %p779_p7 = por %p778_p6, %p777_p5 }
  0x5a   :  { %609 = vmatpush3.bf16.msra.mxu1 %v671_v29  ;;  %p780_p8 = pnand %p779_p7, %p773_p4 }
  0x5b   :  { %571 = vmatpush3.bf16.msra.mxu0 %v661_v15  ;;  %610 = vmatprep.subr.bf16.mxu1 %v808_v0 }
  0x5c   :  { %572 = vmatprep.subr.bf16.mxu0 %v662_v16 }
  0x5e   :  { %611 = vmatpush3.bf16.msra.mxu1 %v672_v31 }
  0x5f   :  { %573 = vmatpush3.bf16.msra.mxu0 %v663_v21  ;;  %612 = vmatprep.subr.bf16.mxu1 %v808_v0 }
  0x60   :  { %574 = vmatprep.subr.bf16.mxu0 %v664_v24 }
  0x62   :  { %613 = vmatpush3.bf16.msra.mxu1 %v673_v32 }
  0x63   :  { %575 = vmatpush3.bf16.msra.mxu0 %v665_v25  ;;  %614 = vmatprep.subr.bf16.mxu1 %v808_v0 }
  0x64   :  { %576 = vmatprep.subr.bf16.mxu0 %v666_v26 }
  0x66   :  { %615 = vmatpush3.bf16.msra.mxu1 %v674_v33 }
  0x67   :  { %577 = vmatpush3.bf16.msra.mxu0 %v667_v28  ;;  %616 = vmatprep.subr.bf16.mxu1 %v808_v0 }
  0x68   :  { %622 = vmatprep.subr.bf16.mxu0 %v808_v0 }
  0x6a   :  { %275 = vmatmul.mubr.bf16.vlgmr.msra.gmra.mrb[0].mxu0 %v136_v30  ;;  %617 = vmatpush3.bf16.msra.mxu1 %v675_v34 }
  0x6b   :  { %638 = vmatprep.mubr.msk.bf16.mxu0 %vm810_vm0, %v808_v0  ;;  %623 = vmatpush3.bf16.msra.mxu0 %v676_v35 }
  0x6c   :  { %624 = vmatprep.subr.bf16.mxu0 %v808_v0 }
  0x6f   :  { %625 = vmatpush3.bf16.msra.mxu0 %v677_v36 }
  0x70   :  { %626 = vmatprep.subr.bf16.mxu0 %v808_v0 }
  0x73   :  { %627 = vmatpush3.bf16.msra.mxu0 %v678_v37 }
  0x74   :  { %628 = vmatprep.subr.bf16.mxu0 %v808_v0 }
  0x77   :  { %629 = vmatpush3.bf16.msra.mxu0 %v679_v38 }
  0x78   :  { %630 = vmatprep.subr.bf16.mxu0 %v808_v0 }
  0x7b   :  { %631 = vmatpush3.bf16.msra.mxu0 %v680_v39 }
  0x7c   :  { %632 = vmatprep.subr.bf16.mxu0 %v808_v0 }
  0x7f   :  { %633 = vmatpush3.bf16.msra.mxu0 %v681_v40 }
  0x80   :  { %634 = vmatprep.subr.bf16.mxu0 %v808_v0 }
  0x83   :  { %635 = vmatpush3.bf16.msra.mxu0 %v682_v50 }
  0x84   :  { %636 = vmatprep.subr.bf16.mxu0 %v808_v0 }
  0x87   :  { %637 = vmatpush3.bf16.msra.mxu0 %v683_v51 }
 0x13d   :  { %v578_v41 = vpop.f32.mrb[0].mxu0 }
 0x13e   :  { %v579_v43 = vpop.f32.mrb[1].mxu0 }
 0x13f   :  { %v580_v44 = vadd.f32 %v579_v43, %v578_v41  ;;  %v581_v45 = vpop.f32.mrb[2].mxu0 }
 0x140   :  { %v582_v46 = vpop.f32.mrb[3].mxu0 }
 0x141   :  { %v277_v47 = vadd.f32 %v580_v44, %v526_v42 }
 0x143   :  { %v282_v48 = vmax.f32 %v277_v47, 0.0 }
 0x145   :  { %v283_v49 = vpack.c.bf16 %v282_v48, %v282_v48 }
 0x147   :  { %619 = vmatmul.mubr.bf16.vlgmr.msra.gmra.mrb[0].mxu1 %v283_v49 }
 0x21a   :  { %v389_v53 = vpop.f32.mrb[0].mxu1 }
 0x21b   :  { %v390_v54 = vadd.f32 %v544_v52, %v389_v53  ;;  %v620_v55 = vpop.f32.mrb[1].mxu1 }
 0x21c   :  { %v392_v56 = vpop.f32.mrb[2].mxu1 }
 0x21d   :  { %v395_v57 = vmax.f32 %v390_v54, 0.0  ;;  %v621_v58 = vpop.f32.mrb[3].mxu1 }
 0x21f   :  { %v396_v59 = vpack.c.bf16 %v395_v57, %v395_v57 }
 0x221   :  { %639 = vmatmul.mubr.bf16.vlgmr.msra.gmra.mrb[4].mxu0 %v396_v59 }
 0x2f4   :  { %v502_v61 = vpop.f32.mrb[4].mxu0 }
 0x2f5   :  { %v503_v62 = vadd.f32 %v553_v60, %v502_v61  ;;  %v640_v63 = vpop.f32.mrb[5].mxu0 }
 0x2f6   :  { %v505_v0 = vpop.f32.mrb[6].mxu0 }
 0x2f7   :  { %508 = vst [vmem:[#allocation10] sm:$0x3] %v503_v62  ;;  %v641_v1 = vpop.f32.mrb[7].mxu0 }
 0x2f8   :  { %783 = shalt.err (!%p780_p8)
}
 0x2f9   :  { %s784_s6 = scalar_lea.hbm %s955_s7, 32 }
 0x2fa   :  { %p785_p9 = scmp.ne.s32.totalorder %s955_s7, %s784_s6  ;;  %p788_p10 = scmp.lt.u32.totalorder %s784_s6, %s955_s7 }
 0x2fc   :  { %p790_p11 = pnand %p788_p10, %p785_p9 }
 0x2fe   :  { %793 = shalt.err (!%p790_p11)
}
 0x2ff   :  { %518 = dma.vmem_to_hbm [thread:$0]  %s516_s29, 32, %s955_s7, [#allocation4]  }
 0x300   :  { %800 = dma.done.wait [#allocation4], 32  }
 0x301   :  { %801 = vsyncadd [#allocation4], 4294967264 }
 0x302   :  { %522 = vsyncpa [#allocation3], 1 }
 0x303   :  { %523 = vsyncpa [#allocation6], 1 }
 0x304   :  { %524 = vsyncpa [#allocation9], 1 }
 0x305   :  { %525 = vsyncpa [#allocation4], 1 }

// kernel: tpu_custom_call.1
= control target key start
LH: loop header
LB: loop body
LE: loop exit
PB: predicated region body
PF: predicated region fallthrough
CT: control target
= control target key end

     0   :  { %12 = vsyncpa [#allocation3], 0  ;;  %s948_s0 = inlined_call_operand.hbm [shape: bf16[2,256], index: 0, kind: input, shape index: {}]   ;;  %s949_s1 = inlined_call_operand.hbm [shape: bf16[256,128], index: 1, kind: input, shape index: {}]   ;;  %s950_s2 = inlined_call_operand.vmem [shape: f32[1,128], index: 2, kind: input, shape index: {}]   ;;  %s951_s3 = inlined_call_operand.hbm [shape: bf16[128,128], index: 3, kind: input, shape index: {}]   ;;  %s952_s4 = inlined_call_operand.vmem [shape: f32[1,128], index: 4, kind: input, shape index: {}]   ;;  %s953_s5 = inlined_call_operand.hbm [shape: bf16[128,128], index: 5, kind: input, shape index: {}]   ;;  %s954_s6 = inlined_call_operand.vmem [shape: f32[1,128], index: 6, kind: input, shape index: {}]   ;;  %s955_s7 = inlined_call_operand.hbm [shape: f32[2,128], index: 7, kind: output, shape index: {}]  }
   0x1   :  { %13 = vsyncpa [#allocation6], 0 }
   0x2   :  { %14 = vsyncpa [#allocation9], 0 }
   0x3   :  { %15 = vsyncpa [#allocation4], 0  ;;  %s802_s24 = smov [#allocation5]   ;;  %s684_s28 = scalar_lea.hbm %s949_s1, 2048 }
   0x4   :  { %s31_s25 = sshll.u32 %s802_s24, 4  ;;  %p685_p0 = scmp.ne.s32.totalorder %s949_s1, %s684_s28  ;;  %s32_s25 = int_to_ptr.vmem [resolvable:$true] %s31_s25 }
   0x5   :  { %p688_p1 = scmp.lt.u32.totalorder %s684_s28, %s949_s1 }
   0x7   :  { %p690_p2 = pnand %p688_p1, %p685_p0 }
   0x9   :  { %693 = shalt.err (!%p690_p2)
}
   0xa   :  { %s694_s10 = scalar_lea.vmem %s32_s25, 2048  ;;  %p699_p4 = scmp.lt.s32.totalorder %s32_s25, %s32_s25 }
   0xb   :  { %p695_p3 = scmp.ne.s32.totalorder %s32_s25, %s694_s10  ;;  %p700_p5 = scmp.lt.s32.totalorder %s694_s10, %s694_s10 }
   0xd   :  { %p701_p6 = por %p700_p5, %p699_p4 }
   0xf   :  { %p702_p7 = pnand %p701_p6, %p695_p3 }
  0x11   :  { %705 = shalt.err (!%p702_p7)
}
  0x12   :  { %s803_s11 = smov 64   ;;  %s804_s12 = smov 4  }
  0x13   :  { %37 = dma.hbm_to_vmem [thread:$0]  %s949_s1, 2048, %s32_s25, [#allocation6], %s803_s11, %s803_s11, %s804_s12  }
  0x14   :  { %s805_s15 = smov [#allocation2]   ;;  %s806_s17 = smov [#allocation7]  }
  0x15   :  { %s22_s16 = sshll.u32 %s805_s15, 4  ;;  %s45_s18 = sshll.u32 %s806_s17, 4  ;;  %s23_s16 = int_to_ptr.vmem [resolvable:$true] %s22_s16  ;;  %s46_s18 = int_to_ptr.vmem [resolvable:$true] %s45_s18 }
  0x16   :  { %s706_s21 = scalar_lea.hbm %s948_s0, 32 }
  0x17   :  { %p707_p8 = scmp.ne.s32.totalorder %s948_s0, %s706_s21  ;;  %p710_p9 = scmp.lt.u32.totalorder %s706_s21, %s948_s0 }
  0x19   :  { %p712_p10 = pnand %p710_p9, %p707_p8 }
  0x1b   :  { %715 = shalt.err (!%p712_p10)
}
  0x1c   :  { %s716_s1 = scalar_lea.vmem %s23_s16, 32  ;;  %p721_p12 = scmp.lt.s32.totalorder %s23_s16, %s23_s16 }
  0x1d   :  { %p717_p11 = scmp.ne.s32.totalorder %s23_s16, %s716_s1  ;;  %p722_p13 = scmp.lt.s32.totalorder %s716_s1, %s716_s1 }
  0x1f   :  { %p723_p0 = por %p722_p13, %p721_p12 }
  0x21   :  { %p724_p1 = pnand %p723_p0, %p717_p11 }
  0x23   :  { %727 = shalt.err (!%p724_p1)
}
  0x24   :  { %25 = dma.hbm_to_vmem [thread:$0]  %s948_s0, 32, %s23_s16, [#allocation3]  }
  0x25   :  { %s728_s30 = scalar_lea.hbm %s951_s3, 1024 }
  0x26   :  { %p729_p2 = scmp.ne.s32.totalorder %s951_s3, %s728_s30  ;;  %p732_p3 = scmp.lt.u32.totalorder %s728_s30, %s951_s3 }
  0x28   :  { %p734_p4 = pnand %p732_p3, %p729_p2 }
  0x2a   :  { %737 = shalt.err (!%p734_p4)
}
  0x2b   :  { %s738_s14 = scalar_lea.vmem %s46_s18, 1024  ;;  %p743_p6 = scmp.lt.s32.totalorder %s46_s18, %s46_s18 }
  0x2c   :  { %p739_p5 = scmp.ne.s32.totalorder %s46_s18, %s738_s14  ;;  %p744_p7 = scmp.lt.s32.totalorder %s738_s14, %s738_s14 }
  0x2e   :  { %p745_p8 = por %p744_p7, %p743_p6 }
  0x30   :  { %p746_p9 = pnand %p745_p8, %p739_p5 }
  0x32   :  { %749 = shalt.err (!%p746_p9)
}
  0x33   :  { %51 = dma.hbm_to_vmem [thread:$0]  %s951_s3, 1024, %s46_s18, [#allocation6], %s803_s11, %s803_s11, %s804_s12  }
  0x34   :  { %s807_s16 = smov [#allocation8]   ;;  %s750_s21 = scalar_lea.hbm %s953_s5, 1024 }
  0x35   :  { %s59_s17 = sshll.u32 %s807_s16, 4  ;;  %p751_p10 = scmp.ne.s32.totalorder %s953_s5, %s750_s21  ;;  %s60_s17 = int_to_ptr.vmem [resolvable:$true] %s59_s17 }
  0x36   :  { %p754_p11 = scmp.lt.u32.totalorder %s750_s21, %s953_s5 }
  0x38   :  { %p756_p12 = pnand %p754_p11, %p751_p10 }
  0x3a   :  { %759 = shalt.err (!%p756_p12)
}
  0x3b   :  { %s760_s1 = scalar_lea.vmem %s60_s17, 1024  ;;  %p765_p0 = scmp.lt.s32.totalorder %s60_s17, %s60_s17 }
  0x3c   :  { %p761_p13 = scmp.ne.s32.totalorder %s60_s17, %s760_s1  ;;  %p766_p1 = scmp.lt.s32.totalorder %s760_s1, %s760_s1 }
  0x3e   :  { %p767_p2 = por %p766_p1, %p765_p0 }
  0x40   :  { %p768_p3 = pnand %p767_p2, %p761_p13 }
  0x42   :  { %771 = shalt.err (!%p768_p3)
}
  0x43   :  { %65 = dma.hbm_to_vmem [thread:$0]  %s953_s5, 1024, %s60_s17, [#allocation9], %s803_s11, %s803_s11, %s804_s12  }
  0x44   :  { %794 = dma.done.wait [#allocation3], 32  }
  0x45   :  { %795 = vsyncadd [#allocation3], 4294967264 }
  0x46   :  { %796 = dma.done.wait [#allocation6], 3072  }
  0x47   :  { %797 = vsyncadd [#allocation6], 4294964224 }
  0x48   :  { %798 = dma.done.wait [#allocation9], 1024  }
  0x49   :  { %799 = vsyncadd [#allocation9], 4294966272  ;;  %v808_v0 = vmov 0.0   ;;  %v652_v1 = vld [vmem:[#allocation5 + $0x40] sm:$0xff]   ;;  %v654_v3 = vld [vmem:[#allocation5 + $0x48] sm:$0xff]   ;;  %v133_v9 = vlaneseq  ;;  %vm810_vm0 = vmmov 0  }
  0x4a   :  { %602 = vmatprep.subr.bf16.mxu1 %v808_v0  ;;  %v653_v2 = vld [vmem:[#allocation5] sm:$0xff]   ;;  %562 = vmatprep.subr.bf16.mxu0 %v652_v1  ;;  %v655_v4 = vld [vmem:[#allocation5 + $0x8] sm:$0xff]   ;;  %v656_v5 = vld [vmem:[#allocation5 + $0x50] sm:$0xff]   ;;  %v809_v7 = vmov 1966171168   ;;  %s811_s28 = smov [#allocation10]  }
  0x4b   :  { %563 = vmatpush3.bf16.msra.mxu0 %v653_v2  ;;  %v657_v6 = vld [vmem:[#allocation5 + $0x10] sm:$0xff]   ;;  %v131_v8 = vunpack.c.l.s4 %v809_v7  ;;  %v658_v10 = vld [vmem:[#allocation5 + $0x58] sm:$0xff]   ;;  %v134_v13 = vshrl.u32 %v133_v9, 7  ;;  %v660_v14 = vld [vmem:[#allocation5 + $0x60] sm:$0xff]   ;;  %618 = vmatprep.mubr.msk.bf16.mxu1 %vm810_vm0, %v808_v0  ;;  %s515_s29 = sshll.u32 %s811_s28, 4  ;;  %s516_s29 = int_to_ptr.vmem [resolvable:$true] %s515_s29 }
  0x4c   :  { %564 = vmatprep.subr.bf16.mxu0 %v654_v3  ;;  %v659_v11 = vld [vmem:[#allocation5 + $0x18] sm:$0xff]   ;;  %v661_v15 = vld [vmem:[#allocation5 + $0x20] sm:$0xff]   ;;  %v662_v16 = vld [vmem:[#allocation5 + $0x68] sm:$0xff]   ;;  %p777_p5 = scmp.lt.s32.totalorder %s516_s29, %s516_s29 }
  0x4d   :  { %v132_v12 = vunpack.c.0.s8 %v131_v8  ;;  %v527_v18 = vld.sshfl [vmem:[#allocation2] sm:$0x11 pattern:$0x75316420]  ;;  %v668_v20 = vld [vmem:[#allocation7] sm:$0xff]   ;;  %v663_v21 = vld [vmem:[#allocation5 + $0x28] sm:$0xff]  }
  0x4e   :  { %v129_v19 = vcombine.high %v527_v18, %v527_v18  ;;  %603 = vmatpush3.bf16.msra.mxu1 %v668_v20  ;;  %v669_v23 = vld [vmem:[#allocation7 + $0x8] sm:$0xff]   ;;  %v664_v24 = vld [vmem:[#allocation5 + $0x70] sm:$0xff]   ;;  %v666_v26 = vld [vmem:[#allocation5 + $0x78] sm:$0xff]  }
  0x4f   :  { %565 = vmatpush3.bf16.msra.mxu0 %v655_v4  ;;  %v135_v17 = vsub.s32 %v132_v12, %v134_v13  ;;  %604 = vmatprep.subr.bf16.mxu1 %v808_v0  ;;  %v665_v25 = vld [vmem:[#allocation5 + $0x30] sm:$0xff]   ;;  %v667_v28 = vld [vmem:[#allocation5 + $0x38] sm:$0xff]   ;;  %v672_v31 = vld [vmem:[#allocation7 + $0x20] sm:$0xff]  }
  0x50   :  { %566 = vmatprep.subr.bf16.mxu0 %v656_v5  ;;  %v670_v27 = vld [vmem:[#allocation7 + $0x10] sm:$0xff]   ;;  %v671_v29 = vld [vmem:[#allocation7 + $0x18] sm:$0xff]   ;;  %v673_v32 = vld [vmem:[#allocation7 + $0x28] sm:$0xff]  }
  0x51   :  { %v143_v22 = vrot.slane %v129_v19, %v135_v17  ;;  %v136_v30 = vrot.slane %v527_v18, %v135_v17  ;;  %v674_v33 = vld [vmem:[#allocation7 + $0x30] sm:$0xff]   ;;  %v675_v34 = vld [vmem:[#allocation7 + $0x38] sm:$0xff]   ;;  %v676_v35 = vld [vmem:[#allocation8] sm:$0xff]  }
  0x52   :  { %605 = vmatpush3.bf16.msra.mxu1 %v669_v23  ;;  %v677_v36 = vld [vmem:[#allocation8 + $0x8] sm:$0xff]   ;;  %v678_v37 = vld [vmem:[#allocation8 + $0x10] sm:$0xff]   ;;  %v679_v38 = vld [vmem:[#allocation8 + $0x18] sm:$0xff]  }
  0x53   :  { %567 = vmatpush3.bf16.msra.mxu0 %v657_v6  ;;  %274 = vmatprep.mubr.bf16.mxu0 %v143_v22  ;;  %v680_v39 = vld [vmem:[#allocation8 + $0x20] sm:$0xff]   ;;  %v681_v40 = vld [vmem:[#allocation8 + $0x28] sm:$0xff]   ;;  %v526_v42 = vld [vmem:[%s950_s2] ss:$0 sm:$0xff] }
  0x54   :  { %568 = vmatprep.subr.bf16.mxu0 %v658_v10  ;;  %606 = vmatprep.subr.bf16.mxu1 %v808_v0  ;;  %v682_v50 = vld [vmem:[#allocation8 + $0x30] sm:$0xff]   ;;  %v683_v51 = vld [vmem:[#allocation8 + $0x38] sm:$0xff]  }
  0x55   :  { %v544_v52 = vld [vmem:[%s952_s4] ss:$0 sm:$0xff]  ;;  %s772_s4 = scalar_lea.vmem %s516_s29, 32 }
  0x56   :  { %607 = vmatpush3.bf16.msra.mxu1 %v670_v27  ;;  %v553_v60 = vld [vmem:[%s954_s6] ss:$0 sm:$0xff]  ;;  %p773_p4 = scmp.ne.s32.totalorder %s516_s29, %s772_s4  ;;  %p778_p6 = scmp.lt.s32.totalorder %s772_s4, %s772_s4 }
  0x57   :  { %569 = vmatpush3.bf16.msra.mxu0 %v659_v11  ;;  %608 = vmatprep.subr.bf16.mxu1 %v808_v0 }
  0x58   :  { %570 = vmatprep.subr.bf16.mxu0 %v660_v14  ;;  %p779_p7 = por %p778_p6, %p777_p5 }
  0x5a   :  { %609 = vmatpush3.bf16.msra.mxu1 %v671_v29  ;;  %p780_p8 = pnand %p779_p7, %p773_p4 }
  0x5b   :  { %571 = vmatpush3.bf16.msra.mxu0 %v661_v15  ;;  %610 = vmatprep.subr.bf16.mxu1 %v808_v0 }
  0x5c   :  { %572 = vmatprep.subr.bf16.mxu0 %v662_v16 }
  0x5e   :  { %611 = vmatpush3.bf16.msra.mxu1 %v672_v31 }
  0x5f   :  { %573 = vmatpush3.bf16.msra.mxu0 %v663_v21  ;;  %612 = vmatprep.subr.bf16.mxu1 %v808_v0 }
  0x60   :  { %574 = vmatprep.subr.bf16.mxu0 %v664_v24 }
  0x62   :  { %613 = vmatpush3.bf16.msra.mxu1 %v673_v32 }
  0x63   :  { %575 = vmatpush3.bf16.msra.mxu0 %v665_v25  ;;  %614 = vmatprep.subr.bf16.mxu1 %v808_v0 }
  0x64   :  { %576 = vmatprep.subr.bf16.mxu0 %v666_v26 }
  0x66   :  { %615 = vmatpush3.bf16.msra.mxu1 %v674_v33 }
  0x67   :  { %577 = vmatpush3.bf16.msra.mxu0 %v667_v28  ;;  %616 = vmatprep.subr.bf16.mxu1 %v808_v0 }
  0x68   :  { %622 = vmatprep.subr.bf16.mxu0 %v808_v0 }
  0x6a   :  { %275 = vmatmul.mubr.bf16.vlgmr.msra.gmra.mrb[0].mxu0 %v136_v30  ;;  %617 = vmatpush3.bf16.msra.mxu1 %v675_v34 }
  0x6b   :  { %638 = vmatprep.mubr.msk.bf16.mxu0 %vm810_vm0, %v808_v0  ;;  %623 = vmatpush3.bf16.msra.mxu0 %v676_v35 }
  0x6c   :  { %624 = vmatprep.subr.bf16.mxu0 %v808_v0 }
  0x6f   :  { %625 = vmatpush3.bf16.msra.mxu0 %v677_v36 }
  0x70   :  { %626 = vmatprep.subr.bf16.mxu0 %v808_v0 }
  0x73   :  { %627 = vmatpush3.bf16.msra.mxu0 %v678_v37 }
  0x74   :  { %628 = vmatprep.subr.bf16.mxu0 %v808_v0 }
  0x77   :  { %629 = vmatpush3.bf16.msra.mxu0 %v679_v38 }
  0x78   :  { %630 = vmatprep.subr.bf16.mxu0 %v808_v0 }
  0x7b   :  { %631 = vmatpush3.bf16.msra.mxu0 %v680_v39 }
  0x7c   :  { %632 = vmatprep.subr.bf16.mxu0 %v808_v0 }
  0x7f   :  { %633 = vmatpush3.bf16.msra.mxu0 %v681_v40 }
  0x80   :  { %634 = vmatprep.subr.bf16.mxu0 %v808_v0 }
  0x83   :  { %635 = vmatpush3.bf16.msra.mxu0 %v682_v50 }
  0x84   :  { %636 = vmatprep.subr.bf16.mxu0 %v808_v0 }
  0x87   :  { %637 = vmatpush3.bf16.msra.mxu0 %v683_v51 }
 0x13d   :  { %v578_v41 = vpop.f32.mrb[0].mxu0 }
 0x13e   :  { %v579_v43 = vpop.f32.mrb[1].mxu0 }
 0x13f   :  { %v580_v44 = vadd.f32 %v579_v43, %v578_v41  ;;  %v581_v45 = vpop.f32.mrb[2].mxu0 }
 0x140   :  { %v582_v46 = vpop.f32.mrb[3].mxu0 }
 0x141   :  { %v277_v47 = vadd.f32 %v580_v44, %v526_v42 }
 0x143   :  { %v282_v48 = vmax.f32 %v277_v47, 0.0 }
 0x145   :  { %v283_v49 = vpack.c.bf16 %v282_v48, %v282_v48 }
 0x147   :  { %619 = vmatmul.mubr.bf16.vlgmr.msra.gmra.mrb[0].mxu1 %v283_v49 }
 0x21a   :  { %v389_v53 = vpop.f32.mrb[0].mxu1 }
 0x21b   :  { %v390_v54 = vadd.f32 %v544_v52, %v389_v53  ;;  %v620_v55 = vpop.f32.mrb[1].mxu1 }
 0x21c   :  { %v392_v56 = vpop.f32.mrb[2].mxu1 }
 0x21d   :  { %v395_v57 = vmax.f32 %v390_v54, 0.0  ;;  %v621_v58 = vpop.f32.mrb[3].mxu1 }
 0x21f   :  { %v396_v59 = vpack.c.bf16 %v395_v57, %v395_v57 }
 0x221   :  { %639 = vmatmul.mubr.bf16.vlgmr.msra.gmra.mrb[4].mxu0 %v396_v59 }
 0x2f4   :  { %v502_v61 = vpop.f32.mrb[4].mxu0 }
 0x2f5   :  { %v503_v62 = vadd.f32 %v553_v60, %v502_v61  ;;  %v640_v63 = vpop.f32.mrb[5].mxu0 }
 0x2f6   :  { %v505_v0 = vpop.f32.mrb[6].mxu0 }
 0x2f7   :  { %508 = vst [vmem:[#allocation10] sm:$0x3] %v503_v62  ;;  %v641_v1 = vpop.f32.mrb[7].mxu0 }
 0x2f8   :  { %783 = shalt.err (!%p780_p8)
}
 0x2f9   :  { %s784_s6 = scalar_lea.hbm %s955_s7, 32 }
 0x2fa   :  { %p785_p9 = scmp.ne.s32.totalorder %s955_s7, %s784_s6  ;;  %p788_p10 = scmp.lt.u32.totalorder %s784_s6, %s955_s7 }
 0x2fc   :  { %p790_p11 = pnand %p788_p10, %p785_p9 }
 0x2fe   :  { %793 = shalt.err (!%p790_p11)
}
 0x2ff   :  { %518 = dma.vmem_to_hbm [thread:$0]  %s516_s29, 32, %s955_s7, [#allocation4]  }
 0x300   :  { %800 = dma.done.wait [#allocation4], 32  }
 0x301   :  { %801 = vsyncadd [#allocation4], 4294967264 }
 0x302   :  { %522 = vsyncpa [#allocation3], 1 }
 0x303   :  { %523 = vsyncpa [#allocation6], 1 }
 0x304   :  { %524 = vsyncpa [#allocation9], 1 }
 0x305   :  { %525 = vsyncpa [#allocation4], 1 }

</bundles_post_ra>
